<compile_context>
chip_gen: v5e
topology: v5e:2x2
jax: 0.10.0
libtpu: 0.0.40
codegen_flags: <defaults>
</compile_context>

<pallas_src>
import jax
import jax.numpy as jnp
from jax.experimental import pallas as pl
from jax.experimental.pallas import tpu as pltpu

NUM_CLASSES = 10
PAD_CLASSES = 128          # lane-dense output width (last dim multiple of 128)


def _one_hot_kernel(y_ref, t_ref):
    # y_ref: (TILE_B, 1) int32 labels   t_ref: (TILE_B, PAD_CLASSES) float32
    y = y_ref[...]                                                  # (TILE_B, 1)
    lanes = jax.lax.broadcasted_iota(jnp.int32, t_ref.shape, 1)     # (TILE_B, 128)
    # scatter_(1, y, 1)  ==  (lane_index == y) ? 1 : 0   (padded rows use y=-1,
    # which matches no lane, so they stay all-zero and are sliced off outside)
    t_ref[...] = jnp.where(lanes == y, 1.0, 0.0).astype(t_ref.dtype)


def uniform_sampling_generator_forward(x, y, *, tile_b=8):
    """Returns (x, one_hot(y, 10)) — the UniformSamplingGenerator forward pass.

    tile_b: batch tile per grid step.  8 is plenty for the toy demo; use 256
    (v6e/v7x) or 128 (v5e) for production batch sizes.
    """
    B = y.shape[0]
    tile_b = min(tile_b, max(8, B))
    b_pad = pl.cdiv(B, tile_b) * tile_b

    y2 = y.astype(jnp.int32).reshape(B, 1)
    if b_pad != B:
        # pad with -1 so padded rows produce all-zero one-hot rows
        y2 = jnp.pad(y2, ((0, b_pad - B), (0, 0)), constant_values=-1)

    t_padded = pl.pallas_call(
        _one_hot_kernel,
        out_shape=jax.ShapeDtypeStruct((b_pad, PAD_CLASSES), jnp.float32),
        grid=(b_pad // tile_b,),
        in_specs=[pl.BlockSpec((tile_b, 1), lambda i: (i, 0))],
        out_specs=pl.BlockSpec((tile_b, PAD_CLASSES), lambda i: (i, 0)),
        compiler_params=pltpu.CompilerParams(
            dimension_semantics=("parallel",),   # shard batch tiles across TCs (v7x)
        ),
        cost_estimate=pl.CostEstimate(
            flops=0,
            transcendentals=0,
            bytes_accessed=4 * b_pad * (1 + PAD_CLASSES),
        ),
    )(y2)

    # lane-dense (B_pad, 128) kernel output -> (B, 10) module output
    t = t_padded[:B, :NUM_CLASSES]
    # .to(device) is an identity here; x is returned untouched.
    return x, t


# TODO(synk): EndlessDataLoader / dataset iteration is host-side Python (no
# Pallas equivalent); the example batch below stands in for next(self.sampler).

if __name__ == "__main__":
    key = jax.random.PRNGKey(0)
    kx, ky = jax.random.split(key)

    # small batch "sampled" in-script (stands in for the DataLoader batch)
    B, C, H, W = 16, 4, 16, 16
    x = jax.random.normal(kx, (B, C, H, W), jnp.float32)
    y = jax.random.randint(ky, (B,), 0, NUM_CLASSES, dtype=jnp.int32)

    x_out, t = uniform_sampling_generator_forward(x, y)
    jax.block_until_ready((x_out, t))

    # reference: torch's zeros(B,10).scatter_(1, y, 1) == one_hot(y, 10)
    t_ref = jax.nn.one_hot(y, NUM_CLASSES, dtype=jnp.float32)
    assert t.shape == (B, NUM_CLASSES)
    assert jnp.array_equal(t, t_ref)
    assert jnp.array_equal(x_out, x)

    print("KERNEL_OK")
</pallas_src>

<mosaic_0001>
module attributes {stable_mosaic.version = 11 : i64} {
  func.func @_one_hot_kernel(%arg0: i32, %arg1: memref<8x1xi32, #tpu.memory_space<vmem>>, %arg2: memref<8x128xf32, #tpu.memory_space<vmem>>) attributes {dimension_semantics = [#tpu.dimension_semantics<parallel>], iteration_bounds = array<i64: 2>, scalar_prefetch = 0 : i64, scratch_operands = 0 : i64, tpu.core_type = #tpu.core_type<tc>, window_params = [{transform_indices = @transform_0, window_bounds = array<i64: 8, 1>}, {transform_indices = @transform_1, window_bounds = array<i64: 8, 128>}]} {
    %c0 = arith.constant 0 : index
    %c0_0 = arith.constant 0 : index
    %0 = vector.load %arg1[%c0, %c0_0] : memref<8x1xi32, #tpu.memory_space<vmem>>, vector<8x1xi32>
    %1 = tpu.iota {dimensions = array<i32: 1>} : vector<8x128xi32>
    %2 = vector.broadcast %0 : vector<8x1xi32> to vector<8x128xi32>
    %3 = arith.cmpi eq, %1, %2 : vector<8x128xi32>
    %cst = arith.constant 1.000000e+00 : f32
    %cst_1 = arith.constant 0.000000e+00 : f32
    %4 = vector.broadcast %cst : f32 to vector<8x128xf32>
    %5 = vector.broadcast %cst_1 : f32 to vector<8x128xf32>
    %6 = arith.select %3, %4, %5 : vector<8x128xi1>, vector<8x128xf32>
    %c0_2 = arith.constant 0 : index
    %c0_3 = arith.constant 0 : index
    %7 = vector.load %arg2[%c0_2, %c0_3] : memref<8x128xf32, #tpu.memory_space<vmem>>, vector<8x128xf32>
    tpu.vector_store %arg2[%c0_2, %c0_3], %6 {strides = array<i32>} : memref<8x128xf32, #tpu.memory_space<vmem>>, vector<8x128xf32>,
    return
  }
  func.func @transform_0(%arg0: i32) -> (i32, i32) {
    %c0_i32 = arith.constant 0 : i32
    %c0_i32_0 = arith.constant 0 : i32
    return %arg0, %c0_i32 : i32, i32
  }
  func.func @transform_1(%arg0: i32) -> (i32, i32) {
    %c0_i32 = arith.constant 0 : i32
    %c0_i32_0 = arith.constant 0 : i32
    return %arg0, %c0_i32 : i32, i32
  }
}

</mosaic_0001>

<bundles_post_ra>
// kernel: tpu_custom_call.1
= control target key start
LH: loop header
LB: loop body
LE: loop exit
PB: predicated region body
PF: predicated region fallthrough
CT: control target
= control target key end

     0   :  { %6 = vsyncpa [#allocation3], 0  ;;  %s409_s0 = inlined_call_operand.vmem [shape: s32[16,1], index: 0, kind: input, shape index: {}]   ;;  %s410_s1 = inlined_call_operand.hbm [shape: f32[16,128], index: 1, kind: output, shape index: {}]  }
   0x1   :  { %8 = vsyncpa [#allocation3 + $0x1], 0  ;;  %s324_s6 = smov 0   ;;  %s326_s7 = smov 0  }
   0x2   :  { %s328_s8 = smov 0   ;;  %s330_s9 = smov 0  }
   0x3 LB: > { %s345_s10 = sadd.s32 4294967295, %s310_s9   ;;  %s196_s11 = sadd.s32 4294967294, %s310_s9   ;;  %s310_s9 = sphi %s330_s9, %s416_s9   ;;  %s306_s8 = sphi %s328_s8, %s415_s8   ;;  %s302_s7 = sphi %s326_s7, %s414_s7   ;;  %s298_s6 = sphi %s324_s6, %s413_s6  }
   0x4   : > { %s349_s12 = sadd.s32 1, %s310_s9   ;;  %s47_s13 = sadd.s32 1, %s306_s8 }
   0x5   : > { %s44_s14 = ssub.s32 %s310_s9, %s349_s12  ;;  %p57_p0 = scmp.ne.s32.totalorder %s306_s8, %s302_s7 }
   0x6   : > { %p45_p1 = scmp.eq.s32.totalorder %s44_s14, 0  ;;  %p58_p2 = scmp.eq.s32.totalorder %s345_s10, 1 }
   0x7   : > { %p63_p3 = scmp.ne.s32.totalorder %s302_s7, %s298_s6  ;;  %p64_p4 = scmp.eq.s32.totalorder %s196_s11, 1 }
   0x8   : > { %s360_s15 = scalar_select %p45_p1, %s306_s8, %s47_s13  }
   0x9   : > { %p362_p5 = por %p58_p2, %p57_p0  ;;  %p366_p6 = por %p64_p4, %p63_p3 }
   0xa   : > { %p199_p7 = scmp.ge.s32.totalorder %s310_s9, 1  ;;  %p89_p8 = scmp.lt.s32.totalorder %s310_s9, 3 }
   0xc   : > { %p90_p9 = pnand %p199_p7, %p89_p8 }
   0xd   : > { %p108_p10 = scmp.lt.s32.totalorder (!%p90_p9), %s345_s10, 1  ;;  %s105_s23 = sand.u32 (!%p90_p9), 1, %s302_s7  }
   0xe   : > { %93 = sbr.rel (%p90_p9) target bundleno = 144 (0x90), region = 24  ;;  %s200_s24 = sshll.u32 (!%p90_p9), %s105_s23, 3 }
   0xf   : > { %s203_s25 = sshll.u32 (!%p90_p9), %s345_s10, 3  ;;  %s107_s29 = scalar_lea.vmem (!%p90_p9), [#allocation2], %s200_s24 }
  0x10   : > { %s132_s28 = scalar_lea.hbm (!%p90_p9), %s410_s1, %s203_s25  ;;  %s134_s30 = sshll.u32 (!%p90_p9), %s107_s29, 4  ;;  %s135_s30 = int_to_ptr.vmem [resolvable:$true] %s134_s30 }
  0x11   : > { %s136_s2 = sshll.u32 (!%p90_p9), %s132_s28, 4  ;;  %s122_s3 = scalar_lea.sflag (!%p90_p9), [#allocation3], %s105_s23  ;;  %s137_s2 = int_to_ptr.hbm [resolvable:$true] %s136_s2 }
  0x12   : > { %s262_s4 = sshra.s32 (!%p90_p9), %s137_s2, 4  ;;  %s268_s13 = scalar_lea.hbm (!%p90_p9), %s410_s1, 16  ;;  %s263_s4 = int_to_ptr.hbm [resolvable:$true] %s262_s4 }
  0x13   : > { %v312_v0 = vmov 0   ;;  %s109_s18 = scalar_select %p108_p10, %s345_s10, 1  ;;  %v113_v2 = vlaneseq  ;;  %v313_v5 = vmov 0.0  }
  0x14   : > { %247 = vset.pattern.permute.xlu0 %v312_v0  ;;  %s264_s5 = scalar_lea.hbm %s263_s4, 8  ;;  %p269_p0 = scmp.lt.s32.totalorder %s263_s4, %s410_s1 }
  0x15   : > { %s201_s19 = sshll.u32 %s109_s18, 3  ;;  %v114_v3 = vand.u32 127, %v113_v2  ;;  %p265_p11 = scmp.ne.s32.totalorder %s263_s4, %s264_s5 }
  0x16   : > { %s111_s22 = scalar_lea.vmem %s409_s0, %s201_s19  ;;  %p270_p1 = scmp.lt.s32.totalorder %s268_s13, %s264_s5 }
  0x17   : > { %v112_v1 = vld [vmem:[%s111_s22] sm:$0xff]  ;;  %p266_p12 = pnand %p265_p11, %p362_p5 }
  0x18   : > { %116 = vperm.xlu0 %247, %v112_v1   ;;  %p271_p2 = por %p270_p1, %p269_p0 }
  0x19   : > { %p267_p13 = pneg %p266_p12 }
  0x1b   : > { %p272_p3 = pnand %p271_p2, %p267_p13 }
  0x8a   : > { %v117_v4 = vpop.permute.xlu0 %116 }
  0x8b   : > { %vm118_vm0 = vcmp.eq.s32.totalorder %v114_v3, %v117_v4 }
  0x8c   : > { %v119_v6 = vsel %vm118_vm0, 1.0, %v313_v5 }
  0x8d   : > { %120 = vst [vmem:[%s107_s29] sm:$0xff] %v119_v6 }
  0x8e   : > { %275 = shalt.err (!%p272_p3)
}
  0x8f   : > { %206 = dma.vmem_to_hbm [thread:$0]  (%p362_p5), %s135_s30, 128, %s137_s2, %s122_s3  }
  0x90 PF: > { %p212_p4 = scmp.ge.s32.totalorder %s310_s9, 2  ;;  %s148_s19 = sand.u32 1, %s298_s6  }
  0x91   : > { %s149_s20 = scalar_lea.sflag [#allocation3], %s148_s19 }
  0x92   : > { %p209_p7 = pnand %p212_p4, %p366_p6 }
  0x94   : > { %p210_p8 = pneg %p209_p7 }
  0x96   : > { %293 = dma.done.wait (%p210_p8), %s149_s20, 128  }
  0x97   : > { %295 = vsyncadd (%p210_p8), %s149_s20, 4294967168  ;;  %p11_p9 = scmp.ge.s32.totalorder %s349_s12, 4   ;;  %s413_s6 = smov %s302_s7 }
  0x98   : > { %s414_s7 = smov %s306_s8  ;;  %s415_s8 = smov %s360_s15 }
  0x99   : > { %s416_s9 = smov %s349_s12  ;;  %13 = sbr.rel (!%p11_p9) target bundleno = 3 (0x3), region = 59 }
  0x9e   :  { %155 = vsyncpa [#allocation3], 1 }
  0x9f   :  { %157 = vsyncpa [#allocation3 + $0x1], 1 }

</bundles_post_ra>
